<compile_context>
chip_gen: v7x
topology: tpu7x:2x2x1
jax: 0.10.0
libtpu: 0.0.40
codegen_flags: <defaults>
</compile_context>

<pallas_src>
import functools

import jax
import jax.numpy as jnp
from jax.experimental import pallas as pl
from jax.experimental.pallas import tpu as pltpu


def _channel_attention_kernel(x_ref, w1t_ref, b1_ref, w2t_ref, b2_ref,
                              o_ref, acc_ref, *, inv_hw, thw):
    # x_ref  : (tn, C, thw)  input tile (f32 or bf16)
    # w1t_ref: (C, Ch)       conv1 weight, transposed
    # b1_ref : (1, Ch)
    # w2t_ref: (Ch, C)       conv2 weight, transposed
    # b2_ref : (1, C)
    # o_ref  : (tn, C)       sigmoid(MLP(avg_pool(x)))
    # acc_ref: (tn, C, 128)  f32 running spatial sum (persistent scratch)
    hw_step = pl.program_id(1)

    @pl.when(hw_step == 0)
    def _init():
        acc_ref[...] = jnp.zeros_like(acc_ref)

    # Per-step work: lane-aligned 128-wide chunks folded together with plain
    # VPU adds (f32 accumulation; the upcast also covers bf16 inputs on v5e).
    partial = x_ref[:, :, 0:128].astype(jnp.float32)
    for c in range(1, thw // 128):
        partial = partial + x_ref[:, :, c * 128:(c + 1) * 128].astype(jnp.float32)
    acc_ref[...] += partial

    # Epilogue: single lane reduce + tiny MLP + sigmoid, once per batch tile.
    @pl.when(hw_step == pl.num_programs(1) - 1)
    def _finalize():
        pooled = jnp.sum(acc_ref[...], axis=-1) * inv_hw            # (tn, C)
        h = jnp.dot(pooled, w1t_ref[...], preferred_element_type=jnp.float32)
        h = jnp.maximum(h + b1_ref[...], 0.0)                       # (tn, Ch)
        out = jnp.dot(h, w2t_ref[...], preferred_element_type=jnp.float32)
        out = out + b2_ref[...]                                     # (tn, C)
        # sigmoid: exp + approximate reciprocal both live on the EUP slot.
        o_ref[...] = pl.reciprocal(1.0 + jnp.exp(-out),
                                   approx=True).astype(o_ref.dtype)


def _round_up(a, b):
    return -(-a // b) * b


def _choose_tiles(n, c, hw):
    """Pick (tn, thw) so the double-buffered input tile fits a conservative
    VMEM budget on every generation (v5e/v6e: 128 MiB, v7x: 64 MiB physical)."""
    tn = 8 if n % 8 == 0 else n           # keeps the (tn, C) output block legal
    budget = 24 * 1024 * 1024             # bytes for the double-buffered x tile
    per_thw = 2 * tn * c * 4              # f32 worst case, 2 pipeline buffers
    max_thw = max(128, (budget // per_thw) // 128 * 128)
    thw = min(1024, max_thw)              # >=512-wide tiles hit ~85% HBM roofline
    hw128 = _round_up(hw, 128)
    if hw128 <= thw:
        thw = hw128                       # whole spatial extent in one tile
    return tn, thw


def channel_attention(x, w1, b1, w2, b2):
    """x: (N, C, H, W). w1: (Ch, C), b1: (Ch,), w2: (C, Ch), b2: (C,).
    Returns sigmoid(conv2(relu(conv1(avg_pool(x))))) of shape (N, C, 1, 1)."""
    N, C, H, W = x.shape
    Ch = w1.shape[0]
    hw = H * W

    tn, thw = _choose_tiles(N, C, hw)
    hw_pad = _round_up(hw, thw)

    x_flat = x.reshape(N, C, hw)
    if hw_pad != hw:
        # Zero padding leaves the spatial *sum* unchanged; the true 1/(H*W)
        # scale is applied in the kernel epilogue.
        # TODO(synk): for ragged production shapes an in-kernel mask on the
        # last tile would avoid this one extra HBM copy of x.
        x_flat = jnp.pad(x_flat, ((0, 0), (0, 0), (0, hw_pad - hw)))

    # Pre-transpose the 1x1-conv weights so the kernel runs row-major matmuls.
    w1t = w1.T.astype(jnp.float32)        # (C, Ch)
    w2t = w2.T.astype(jnp.float32)        # (Ch, C)
    b1_2d = b1.reshape(1, Ch).astype(jnp.float32)
    b2_2d = b2.reshape(1, C).astype(jnp.float32)

    grid = (N // tn, hw_pad // thw)       # reduction (HW) axis last

    # Explicit scoped-VMEM sizing so the same tiling compiles on v5e/v6e/v7x.
    est = (2 * tn * C * thw * 4           # double-buffered x tile
           + tn * C * 128 * 4             # accumulator scratch
           + 2 * 4 * (2 * C * Ch + C + Ch)  # weights + biases
           + 2 * tn * C * 4)              # output block
    vmem_limit = int(min(est + (16 << 20), 56 << 20))

    kernel = functools.partial(_channel_attention_kernel,
                               inv_hw=1.0 / float(hw), thw=thw)

    out = pl.pallas_call(
        kernel,
        out_shape=jax.ShapeDtypeStruct((N, C), x.dtype),
        grid_spec=pltpu.PrefetchScalarGridSpec(
            num_scalar_prefetch=0,
            grid=grid,
            in_specs=[
                pl.BlockSpec((tn, C, thw), lambda n, h: (n, 0, h)),
                pl.BlockSpec((C, Ch), lambda n, h: (0, 0)),
                pl.BlockSpec((1, Ch), lambda n, h: (0, 0)),
                pl.BlockSpec((Ch, C), lambda n, h: (0, 0)),
                pl.BlockSpec((1, C), lambda n, h: (0, 0)),
            ],
            out_specs=pl.BlockSpec((tn, C), lambda n, h: (n, 0)),
            scratch_shapes=[pltpu.VMEM((tn, C, 128), jnp.float32)],
        ),
        compiler_params=pltpu.CompilerParams(
            dimension_semantics=("parallel", "arbitrary"),
            vmem_limit_bytes=vmem_limit,
        ),
    )(x_flat, w1t, b1_2d, w2t, b2_2d)

    # NOTE: for C < 128 the (tn, C) store is a masked vst; at this epilogue
    # size the cost is negligible, so the output is not lane-padded.
    return out.reshape(N, C, 1, 1)


def _reference(x, w1, b1, w2, b2):
    # Pure-JAX reference mirroring the PyTorch forward.
    avg = jnp.mean(x.astype(jnp.float32), axis=(2, 3))    # (N, C)
    h = jnp.maximum(avg @ w1.T + b1, 0.0)                 # (N, Ch)
    out = h @ w2.T + b2                                   # (N, C)
    return jax.nn.sigmoid(out).reshape(*out.shape, 1, 1).astype(x.dtype)


if __name__ == "__main__":
    # Small shapes consistent with the module: channel divisible by ratio=16,
    # so channel=64 -> hidden=4.
    N, C, H, W = 2, 64, 16, 16
    ratio = 16
    Ch = C // ratio

    key = jax.random.PRNGKey(0)
    kx, k1, kb1, k2, kb2 = jax.random.split(key, 5)

    x = jax.random.normal(kx, (N, C, H, W), dtype=jnp.float32)

    # Deterministic parameter init (Conv2d with 1x1 kernel == dense layer),
    # scaled roughly like PyTorch's default kaiming-uniform fan-in init.
    w1 = jax.random.uniform(k1, (Ch, C), jnp.float32, -1.0, 1.0) / jnp.sqrt(C)
    b1 = jax.random.uniform(kb1, (Ch,), jnp.float32, -1.0, 1.0) / jnp.sqrt(C)
    w2 = jax.random.uniform(k2, (C, Ch), jnp.float32, -1.0, 1.0) / jnp.sqrt(Ch)
    b2 = jax.random.uniform(kb2, (C,), jnp.float32, -1.0, 1.0) / jnp.sqrt(Ch)

    out = channel_attention(x, w1, b1, w2, b2)
    jax.block_until_ready(out)

    ref = _reference(x, w1, b1, w2, b2)
    assert out.shape == (N, C, 1, 1), out.shape
    # Tolerance covers the EUP approximate reciprocal used in the sigmoid.
    assert jnp.allclose(out, ref, atol=2e-3, rtol=2e-3), \
        float(jnp.max(jnp.abs(out - ref)))

    print("KERNEL_OK")
</pallas_src>

<mosaic_0001>
module attributes {stable_mosaic.version = 11 : i64} {
  func.func @_channel_attention_kernel(%arg0: i32, %arg1: i32, %arg2: memref<2x64x256xf32, #tpu.memory_space<vmem>>, %arg3: memref<64x4xf32, #tpu.memory_space<vmem>>, %arg4: memref<1x4xf32, #tpu.memory_space<vmem>>, %arg5: memref<4x64xf32, #tpu.memory_space<vmem>>, %arg6: memref<1x64xf32, #tpu.memory_space<vmem>>, %arg7: memref<2x64xf32, #tpu.memory_space<vmem>>, %arg8: memref<2x64x128xf32, #tpu.memory_space<vmem>>) attributes {dimension_semantics = [#tpu.dimension_semantics<parallel>, #tpu.dimension_semantics<arbitrary>], iteration_bounds = array<i64: 1, 1>, scalar_prefetch = 0 : i64, scratch_operands = 1 : i64, tpu.core_type = #tpu.core_type<tc>, window_params = [{transform_indices = @transform_0, window_bounds = array<i64: 2, 64, 256>}, {pipeline_mode = #tpu.pipeline_mode<synchronous>, transform_indices = @transform_1, window_bounds = array<i64: 64, 4>}, {pipeline_mode = #tpu.pipeline_mode<synchronous>, transform_indices = @transform_2, window_bounds = array<i64: 1, 4>}, {pipeline_mode = #tpu.pipeline_mode<synchronous>, transform_indices = @transform_3, window_bounds = array<i64: 4, 64>}, {pipeline_mode = #tpu.pipeline_mode<synchronous>, transform_indices = @transform_4, window_bounds = array<i64: 1, 64>}, {transform_indices = @transform_5, window_bounds = array<i64: 2, 64>}]} {
    %c0_i32 = arith.constant 0 : i32
    %0 = arith.cmpi eq, %arg1, %c0_i32 : i32
    %1 = arith.extui %0 : i1 to i32
    %c0_i32_0 = arith.constant 0 : i32
    %2 = arith.cmpi ne, %1, %c0_i32_0 : i32
    scf.if %2 {
      %cst = arith.constant 0.000000e+00 : f32
      %12 = vector.broadcast %cst : f32 to vector<2x64x128xf32>
      %c0_13 = arith.constant 0 : index
      %c0_14 = arith.constant 0 : index
      %c0_15 = arith.constant 0 : index
      %13 = vector.load %arg8[%c0_13, %c0_14, %c0_15] : memref<2x64x128xf32, #tpu.memory_space<vmem>>, vector<2x64x128xf32>
      tpu.vector_store %arg8[%c0_13, %c0_14, %c0_15], %12 {strides = array<i32>} : memref<2x64x128xf32, #tpu.memory_space<vmem>>, vector<2x64x128xf32>,
    } else {
    }
    %c0 = arith.constant 0 : index
    %c0_1 = arith.constant 0 : index
    %c0_2 = arith.constant 0 : index
    %3 = vector.load %arg2[%c0, %c0_1, %c0_2] : memref<2x64x256xf32, #tpu.memory_space<vmem>>, vector<2x64x128xf32>
    %c0_3 = arith.constant 0 : index
    %c0_4 = arith.constant 0 : index
    %c128 = arith.constant 128 : index
    %4 = vector.load %arg2[%c0_3, %c0_4, %c128] : memref<2x64x256xf32, #tpu.memory_space<vmem>>, vector<2x64x128xf32>
    %5 = arith.addf %3, %4 : vector<2x64x128xf32>
    %c0_5 = arith.constant 0 : index
    %c0_6 = arith.constant 0 : index
    %c0_7 = arith.constant 0 : index
    %6 = vector.load %arg8[%c0_5, %c0_6, %c0_7] : memref<2x64x128xf32, #tpu.memory_space<vmem>>, vector<2x64x128xf32>
    %7 = arith.addf %6, %5 : vector<2x64x128xf32>
    %c0_8 = arith.constant 0 : index
    %c0_9 = arith.constant 0 : index
    %c0_10 = arith.constant 0 : index
    %8 = vector.load %arg8[%c0_8, %c0_9, %c0_10] : memref<2x64x128xf32, #tpu.memory_space<vmem>>, vector<2x64x128xf32>
    tpu.vector_store %arg8[%c0_8, %c0_9, %c0_10], %7 {strides = array<i32>} : memref<2x64x128xf32, #tpu.memory_space<vmem>>, vector<2x64x128xf32>,
    %c0_i32_11 = arith.constant 0 : i32
    %9 = arith.cmpi eq, %arg1, %c0_i32_11 : i32
    %10 = arith.extui %9 : i1 to i32
    %c0_i32_12 = arith.constant 0 : i32
    %11 = arith.cmpi ne, %10, %c0_i32_12 : i32
    scf.if %11 {
      %c0_13 = arith.constant 0 : index
      %c0_14 = arith.constant 0 : index
      %c0_15 = arith.constant 0 : index
      %12 = vector.load %arg8[%c0_13, %c0_14, %c0_15] : memref<2x64x128xf32, #tpu.memory_space<vmem>>, vector<2x64x128xf32>
      %cst = arith.constant dense<0.000000e+00> : vector<2x64xf32>
      %13 = vector.multi_reduction <add>, %12, %cst [2] : vector<2x64x128xf32> to vector<2x64xf32>
      %cst_16 = arith.constant 3.906250e-03 : f32
      %14 = vector.broadcast %cst_16 : f32 to vector<2x64xf32>
      %15 = arith.mulf %13, %14 : vector<2x64xf32>
      %c0_17 = arith.constant 0 : index
      %c0_18 = arith.constant 0 : index
      %16 = vector.load %arg3[%c0_17, %c0_18] : memref<64x4xf32, #tpu.memory_space<vmem>>, vector<64x4xf32>
      %cst_19 = arith.constant dense<0.000000e+00> : vector<2x4xf32>
      %17 = tpu.matmul %15, %16, %cst_19 {dimension_numbers = #tpu.dot_dimension_numbers<[1], [0], [0], [1], [0, 0, 1, 1], [], []>} : vector<2x64xf32>, vector<64x4xf32>, vector<2x4xf32> -> vector<2x4xf32>
      %c0_20 = arith.constant 0 : index
      %c0_21 = arith.constant 0 : index
      %18 = vector.load %arg4[%c0_20, %c0_21] : memref<1x4xf32, #tpu.memory_space<vmem>>, vector<1x4xf32>
      %19 = vector.broadcast %18 : vector<1x4xf32> to vector<2x4xf32>
      %20 = arith.addf %17, %19 : vector<2x4xf32>
      %cst_22 = arith.constant 0.000000e+00 : f32
      %21 = vector.broadcast %cst_22 : f32 to vector<2x4xf32>
      %22 = arith.maximumf %20, %21 : vector<2x4xf32>
      %c0_23 = arith.constant 0 : index
      %c0_24 = arith.constant 0 : index
      %23 = vector.load %arg5[%c0_23, %c0_24] : memref<4x64xf32, #tpu.memory_space<vmem>>, vector<4x64xf32>
      %cst_25 = arith.constant dense<0.000000e+00> : vector<2x64xf32>
      %24 = tpu.matmul %22, %23, %cst_25 {dimension_numbers = #tpu.dot_dimension_numbers<[1], [0], [0], [1], [0, 0, 1, 1], [], []>} : vector<2x4xf32>, vector<4x64xf32>, vector<2x64xf32> -> vector<2x64xf32>
      %c0_26 = arith.constant 0 : index
      %c0_27 = arith.constant 0 : index
      %25 = vector.load %arg6[%c0_26, %c0_27] : memref<1x64xf32, #tpu.memory_space<vmem>>, vector<1x64xf32>
      %26 = vector.broadcast %25 : vector<1x64xf32> to vector<2x64xf32>
      %27 = arith.addf %24, %26 : vector<2x64xf32>
      %cst_28 = arith.constant 0.000000e+00 : f32
      %28 = vector.broadcast %cst_28 : f32 to vector<2x64xf32>
      %29 = arith.subf %28, %27 : vector<2x64xf32>
      %30 = math.exp %29 : vector<2x64xf32>
      %cst_29 = arith.constant 1.000000e+00 : f32
      %31 = vector.broadcast %cst_29 : f32 to vector<2x64xf32>
      %32 = arith.addf %31, %30 : vector<2x64xf32>
      %33 = tpu.reciprocal %32 {approx = true} : vector<2x64xf32> -> vector<2x64xf32>
      %c0_30 = arith.constant 0 : index
      %c0_31 = arith.constant 0 : index
      %34 = vector.load %arg7[%c0_30, %c0_31] : memref<2x64xf32, #tpu.memory_space<vmem>>, vector<2x64xf32>
      tpu.vector_store %arg7[%c0_30, %c0_31], %33 {strides = array<i32>} : memref<2x64xf32, #tpu.memory_space<vmem>>, vector<2x64xf32>,
    } else {
    }
    return
  }
  func.func @transform_0(%arg0: i32, %arg1: i32) -> (i32, i32, i32) {
    %c0_i32 = arith.constant 0 : i32
    %c0_i32_0 = arith.constant 0 : i32
    return %arg0, %c0_i32, %arg1 : i32, i32, i32
  }
  func.func @transform_1(%arg0: i32, %arg1: i32) -> (i32, i32) {
    %c0_i32 = arith.constant 0 : i32
    %c0_i32_0 = arith.constant 0 : i32
    %c0_i32_1 = arith.constant 0 : i32
    return %c0_i32, %c0_i32_0 : i32, i32
  }
  func.func @transform_2(%arg0: i32, %arg1: i32) -> (i32, i32) {
    %c0_i32 = arith.constant 0 : i32
    %c0_i32_0 = arith.constant 0 : i32
    %c0_i32_1 = arith.constant 0 : i32
    return %c0_i32, %c0_i32_0 : i32, i32
  }
  func.func @transform_3(%arg0: i32, %arg1: i32) -> (i32, i32) {
    %c0_i32 = arith.constant 0 : i32
    %c0_i32_0 = arith.constant 0 : i32
    %c0_i32_1 = arith.constant 0 : i32
    return %c0_i32, %c0_i32_0 : i32, i32
  }
  func.func @transform_4(%arg0: i32, %arg1: i32) -> (i32, i32) {
    %c0_i32 = arith.constant 0 : i32
    %c0_i32_0 = arith.constant 0 : i32
    %c0_i32_1 = arith.constant 0 : i32
    return %c0_i32, %c0_i32_0 : i32, i32
  }
  func.func @transform_5(%arg0: i32, %arg1: i32) -> (i32, i32) {
    %c0_i32 = arith.constant 0 : i32
    %c0_i32_0 = arith.constant 0 : i32
    return %arg0, %c0_i32 : i32, i32
  }
}

</mosaic_0001>

<bundles_post_ra>
// kernel: tpu_custom_call.1
= control target key start
LH: loop header
LB: loop body
LE: loop exit
PB: predicated region body
PF: predicated region fallthrough
CT: control target
= control target key end

     0   :  { %10 = vsyncpa [#allocation4], 0  ;;  %s744_s0 = inlined_call_operand.hbm [shape: f32[2,64,256], index: 0, kind: input, shape index: {}]   ;;  %s745_s1 = inlined_call_operand.vmem [shape: f32[64,4], index: 1, kind: input, shape index: {}]   ;;  %s746_s2 = inlined_call_operand.vmem [shape: f32[1,4], index: 2, kind: input, shape index: {}]   ;;  %s747_s3 = inlined_call_operand.vmem [shape: f32[4,64], index: 3, kind: input, shape index: {}]   ;;  %s748_s4 = inlined_call_operand.vmem [shape: f32[1,64], index: 4, kind: input, shape index: {}]   ;;  %s749_s5 = inlined_call_operand.hbm [shape: f32[2,64], index: 5, kind: output, shape index: {}]  }
   0x1   :  { %11 = vsyncpa [#allocation5], 0  ;;  %s638_s18 = smov [#allocation3]   ;;  %s590_s22 = scalar_lea.hbm %s744_s0, 4096 }
   0x2   :  { %s17_s19 = sshll.u32 %s638_s18, 4  ;;  %p591_p0 = scmp.ne.s32.totalorder %s744_s0, %s590_s22  ;;  %s18_s19 = int_to_ptr.vmem [resolvable:$true] %s17_s19 }
   0x3   :  { %p594_p1 = scmp.lt.u32.totalorder %s590_s22, %s744_s0 }
   0x5   :  { %p596_p2 = pnand %p594_p1, %p591_p0 }
   0x7   :  { %599 = shalt.err (!%p596_p2)
}
   0x8   :  { %s600_s27 = scalar_lea.vmem %s18_s19, 4096  ;;  %p605_p4 = scmp.lt.s32.totalorder %s18_s19, %s18_s19 }
   0x9   :  { %p601_p3 = scmp.ne.s32.totalorder %s18_s19, %s600_s27  ;;  %p606_p5 = scmp.lt.s32.totalorder %s600_s27, %s600_s27 }
   0xb   :  { %p607_p6 = por %p606_p5, %p605_p4 }
   0xd   :  { %p608_p7 = pnand %p607_p6, %p601_p3 }
   0xf   :  { %611 = shalt.err (!%p608_p7)
}
  0x10   :  { %s639_s28 = smov 256   ;;  %s640_s29 = smov 16  }
  0x11   :  { %23 = dma.hbm_to_vmem [thread:$0]  %s744_s0, 4096, %s18_s19, [#allocation4], %s639_s28, %s639_s28, %s640_s29  }
  0x12   :  { %634 = dma.done.wait [#allocation4], 4096  }
  0x13   :  { %635 = vsyncadd [#allocation4], 4294963200  ;;  %v63_v0 = vld [vmem:[#allocation3 + $0x80] sm:$0xff]  ;;  %v79_v1 = vld [vmem:[#allocation3 + $0x88] sm:$0xff]  ;;  %v641_v51 = vmov 0.0|0.0   ;;  %vm642_vm0 = vmmov 0  }
  0x14   :  { %v55_v2 = vld [vmem:[#allocation3] sm:$0xff]  ;;  %v95_v3 = vadd.f32 %v79_v1, %v63_v0  ;;  %v71_v4 = vld [vmem:[#allocation3 + $0x8] sm:$0xff]  ;;  %v64_v5 = vld [vmem:[#allocation3 + $0x90] sm:$0xff]  ;;  %567 = vmatprep.subr.bf16.mxu0 %v641_v51  ;;  %v643_v61 = vmov 0.0   ;;  %vm260_vm1 = vcmask 130112   ;;  %vm267_vm2 = vcmask 195712  }
  0x15   :  { %v80_v6 = vld [vmem:[#allocation3 + $0x98] sm:$0xff]  ;;  %v87_v7 = vadd.f32 %v71_v4, %v55_v2  ;;  %v56_v8 = vld [vmem:[#allocation3 + $0x10] sm:$0xff]  ;;  %v65_v12 = vld [vmem:[#allocation3 + $0xa0] sm:$0xff]  ;;  %559 = vmatprep.mubr.msk.f32.mxu0 %vm642_vm0, %v643_v61  ;;  %562 = vmatprep.subr.mxu1 %v643_v61  ;;  %v249_v2 = vlaneseq  ;;  %vm274_vm3 = vcmask 261312   ;;  %vm281_vm4 = vcmask 326912  }
  0x16   :  { %v72_v9 = vld [vmem:[#allocation3 + $0x18] sm:$0xff]  ;;  %186 = vadd.xlane.f32.xlu1 %v95_v3  ;;  %v96_v10 = vadd.f32 %v80_v6, %v64_v5  ;;  %v81_v13 = vld [vmem:[#allocation3 + $0xa8] sm:$0xff]  ;;  %v57_v14 = vld [vmem:[#allocation3 + $0x20] sm:$0xff]  ;;  %564 = vmatprep.mubr.msk.f32.mxu1 %vm642_vm0, %v643_v61  ;;  %vm288_vm5 = vcmask 392512   ;;  %vm295_vm6 = vcmask 458112   ;;  %vm302_vm7 = vcmask 523712  }
  0x17   :  { %170 = vadd.xlane.f32.xlu0 %v87_v7  ;;  %v88_v11 = vadd.f32 %v72_v9, %v56_v8  ;;  %v73_v15 = vld [vmem:[#allocation3 + $0x28] sm:$0xff]  ;;  %v97_v16 = vadd.f32 %v81_v13, %v65_v12  ;;  %v66_v18 = vld [vmem:[#allocation3 + $0xb0] sm:$0xff]  ;;  %v82_v19 = vld [vmem:[#allocation3 + $0xb8] sm:$0xff]  ;;  %v250_v5 = vand.u32 127, %v249_v2  ;;  %v252_v7 = vshrl.u32 %v249_v2, 7 }
  0x18   :  { %v89_v17 = vadd.f32 %v73_v15, %v57_v14  ;;  %v58_v20 = vld [vmem:[#allocation3 + $0x30] sm:$0xff]  ;;  %v74_v21 = vld [vmem:[#allocation3 + $0x38] sm:$0xff]  ;;  %v98_v22 = vadd.f32 %v82_v19, %v66_v18  ;;  %v67_v24 = vld [vmem:[#allocation3 + $0xc0] sm:$0xff]  ;;  %vm343_vm8 = vcmask 1041409   ;;  %vm345_vm9 = vcmask 523264  }
  0x19   :  { %v90_v23 = vadd.f32 %v74_v21, %v58_v20  ;;  %v83_v25 = vld [vmem:[#allocation3 + $0xc8] sm:$0xff]  ;;  %v59_v26 = vld [vmem:[#allocation3 + $0x40] sm:$0xff]  ;;  %v68_v30 = vld [vmem:[#allocation3 + $0xd0] sm:$0xff]  ;;  %v255_v9 = vadd.s32 4294967288, %v250_v5  ;;  %v276_v12 = vadd.s32 4294967264, %v250_v5  ;;  %v283_v14 = vadd.s32 4294967256, %v250_v5 }
  0x1a   :  { %188 = vadd.xlane.f32.xlu1 %v96_v10  ;;  %v75_v27 = vld [vmem:[#allocation3 + $0x48] sm:$0xff]  ;;  %v99_v28 = vadd.f32 %v83_v25, %v67_v24  ;;  %v84_v31 = vld [vmem:[#allocation3 + $0xd8] sm:$0xff]  ;;  %v60_v32 = vld [vmem:[#allocation3 + $0x50] sm:$0xff]  ;;  %v262_v10 = vadd.s32 4294967280, %v250_v5  ;;  %v253_v15 = vsub.s32 %v250_v5, %v252_v7  ;;  %v290_v19 = vadd.s32 4294967248, %v250_v5 }
  0x1b   :  { %172 = vadd.xlane.f32.xlu0 %v88_v11  ;;  %v91_v29 = vadd.f32 %v75_v27, %v59_v26  ;;  %v76_v33 = vld [vmem:[#allocation3 + $0x58] sm:$0xff]  ;;  %v100_v34 = vadd.f32 %v84_v31, %v68_v30  ;;  %v69_v36 = vld [vmem:[#allocation3 + $0xe0] sm:$0xff]  ;;  %v85_v37 = vld [vmem:[#allocation3 + $0xe8] sm:$0xff]  ;;  %v269_v11 = vadd.s32 4294967272, %v250_v5  ;;  %v286_v25 = vsub.s32 %v283_v14, %v252_v7 }
  0x1c   :  { %v92_v35 = vadd.f32 %v76_v33, %v60_v32  ;;  %v61_v38 = vld [vmem:[#allocation3 + $0x60] sm:$0xff]  ;;  %v77_v39 = vld [vmem:[#allocation3 + $0x68] sm:$0xff]  ;;  %v101_v40 = vadd.f32 %v85_v37, %v69_v36  ;;  %v70_v42 = vld [vmem:[#allocation3 + $0xf0] sm:$0xff]  ;;  %v265_v18 = vsub.s32 %v262_v10, %v252_v7  ;;  %vm431_vm10 = vcmask 1043456  }
  0x1d   :  { %v93_v41 = vadd.f32 %v77_v39, %v61_v38  ;;  %v86_v43 = vld [vmem:[#allocation3 + $0xf8] sm:$0xff]  ;;  %v62_v44 = vld [vmem:[#allocation3 + $0x70] sm:$0xff]  ;;  %v218_v48 = vld [vmem:[%s745_s1] sm:$0xff]  ;;  %v272_v21 = vsub.s32 %v269_v11, %v252_v7  ;;  %v297_v38 = vadd.s32 4294967240, %v250_v5  ;;  %vm427_vm11 = vcmask 31744  }
  0x1e   :  { %190 = vadd.xlane.f32.xlu1 %v97_v16  ;;  %v78_v45 = vld [vmem:[#allocation3 + $0x78] sm:$0xff]  ;;  %v102_v46 = vadd.f32 %v86_v43, %v70_v42  ;;  %v219_v49 = vld [vmem:[%s745_s1 + $0x8] sm:$0xff]  ;;  %v220_v52 = vld [vmem:[%s745_s1 + $0x10] sm:$0xff]  ;;  %vm510_vm12 = vcmask 517120  }
  0x1f   :  { %174 = vadd.xlane.f32.xlu0 %v89_v17  ;;  %v94_v47 = vadd.f32 %v78_v45, %v62_v44  ;;  %v568_v50 = vpack.c.bf16 %v219_v49, %v218_v48  ;;  %v221_v53 = vld [vmem:[%s745_s1 + $0x18] sm:$0xff]  ;;  %v222_v55 = vld [vmem:[%s745_s1 + $0x20] sm:$0xff]  ;;  %v223_v56 = vld [vmem:[%s745_s1 + $0x28] sm:$0xff]  ;;  %v258_v17 = vsub.s32 %v255_v9, %v252_v7 }
  0x20   :  { %v571_v54 = vpack.c.bf16 %v221_v53, %v220_v52  ;;  %v574_v57 = vpack.c.bf16 %v223_v56, %v222_v55  ;;  %v224_v58 = vld [vmem:[%s745_s1 + $0x30] sm:$0xff]  ;;  %v225_v59 = vld [vmem:[%s745_s1 + $0x38] sm:$0xff]  ;;  %v300_v55 = vsub.s32 %v297_v38, %v252_v7 }
  0x21   :  { %569 = vmatpush3.bf16.msra.mxu0 %v568_v50  ;;  %v577_v60 = vpack.c.bf16 %v225_v59, %v224_v58 }
  0x22   :  { %192 = vadd.xlane.f32.xlu1 %v98_v22  ;;  %570 = vmatprep.subr.bf16.mxu0 %v641_v51  ;;  %v279_v22 = vsub.s32 %v276_v12, %v252_v7 }
  0x23   :  { %176 = vadd.xlane.f32.xlu0 %v90_v23 }
  0x25   :  { %572 = vmatpush3.bf16.msra.mxu0 %v571_v54 }
  0x26   :  { %194 = vadd.xlane.f32.xlu1 %v99_v28  ;;  %573 = vmatprep.subr.bf16.mxu0 %v641_v51 }
  0x27   :  { %178 = vadd.xlane.f32.xlu0 %v91_v29 }
  0x29   :  { %575 = vmatpush3.bf16.msra.mxu0 %v574_v57 }
  0x2a   :  { %196 = vadd.xlane.f32.xlu1 %v100_v34  ;;  %576 = vmatprep.subr.bf16.mxu0 %v641_v51  ;;  %v293_v34 = vsub.s32 %v290_v19, %v252_v7 }
  0x2b   :  { %180 = vadd.xlane.f32.xlu0 %v92_v35 }
  0x2d   :  { %578 = vmatpush3.bf16.msra.mxu0 %v577_v60 }
  0x2e   :  { %198 = vadd.xlane.f32.xlu1 %v101_v40 }
  0x2f   :  { %182 = vadd.xlane.f32.xlu0 %v93_v41 }
  0x32   :  { %200 = vadd.xlane.f32.xlu1 %v102_v46 }
  0x33   :  { %184 = vadd.xlane.f32.xlu0 %v94_v47 }
  0xa3   :  { %v187_v62 = vpop.xlane.xlu1 %186 }
  0xa4   :  { %v171_v63 = vpop.xlane.xlu0 %170  ;;  %v210_v27 = vmul.f32 0.00390625, %v187_v62 }
  0xa5   :  { %v202_v31 = vmul.f32 0.00390625, %v171_v63 }
  0xa6   :  { %v307_v43 = vrot.slane %v210_v27, %v253_v15 }
  0xa7   :  { %v189_v0 = vpop.xlane.xlu1 %188  ;;  %v254_v48 = vrot.slane %v202_v31, %v253_v15  ;;  %v419_v15 = vld [vmem:[%s747_s3] sm:$0xf] }
  0xa8   :  { %v173_v1 = vpop.xlane.xlu0 %172  ;;  %v211_v20 = vmul.f32 0.00390625, %v189_v0  ;;  %563 = vmatpush3.msk.msra.mxu1 %vm431_vm10, %v419_v15 }
  0xa9   :  { %v203_v23 = vmul.f32 0.00390625, %v173_v1 }
  0xaa   :  { %v311_v35 = vrot.slane %v211_v20, %v258_v17 }
  0xab   :  { %v191_v3 = vpop.xlane.xlu1 %190  ;;  %v259_v39 = vrot.slane %v203_v23, %v258_v17 }
  0xac   :  { %v175_v4 = vpop.xlane.xlu0 %174  ;;  %v212_v24 = vmul.f32 0.00390625, %v191_v3  ;;  %v312_v52 = vsel %vm260_vm1, %v311_v35, %v307_v43 }
  0xad   :  { %v204_v28 = vmul.f32 0.00390625, %v175_v4  ;;  %v261_v56 = vsel %vm260_vm1, %v259_v39, %v254_v48 }
  0xae   :  { %v316_v40 = vrot.slane %v212_v24, %v265_v18 }
  0xaf   :  { %v193_v6 = vpop.xlane.xlu1 %192  ;;  %v266_v44 = vrot.slane %v204_v28, %v265_v18 }
  0xb0   :  { %v177_v8 = vpop.xlane.xlu0 %176  ;;  %v213_v29 = vmul.f32 0.00390625, %v193_v6  ;;  %v317_v57 = vsel %vm267_vm2, %v316_v40, %v312_v52 }
  0xb1   :  { %v205_v32 = vmul.f32 0.00390625, %v177_v8  ;;  %v268_v61 = vsel %vm267_vm2, %v266_v44, %v261_v56 }
  0xb2   :  { %v321_v45 = vrot.slane %v213_v29, %v272_v21 }
  0xb3   :  { %v195_v13 = vpop.xlane.xlu1 %194  ;;  %v273_v49 = vrot.slane %v205_v32, %v272_v21  ;;  %v529_v21 = vld [vmem:[%s748_s4] ss:$0 sm:$0xff] }
  0xb4   :  { %v179_v16 = vpop.xlane.xlu0 %178  ;;  %v214_v33 = vmul.f32 0.00390625, %v195_v13  ;;  %v322_v62 = vsel %vm274_vm3, %v321_v45, %v317_v57 }
  0xb5   :  { %v206_v36 = vmul.f32 0.00390625, %v179_v16  ;;  %v275_v2 = vsel %vm274_vm3, %v273_v49, %v268_v61  ;;  %v527_v16 = vld [vmem:[%s746_s2] ss:$0 sm:$0xff]  ;;  %s644_s2 = smov [#allocation6]  }
  0xb6   :  { %v326_v50 = vrot.slane %v214_v33, %v279_v22  ;;  %s518_s3 = sshll.u32 %s644_s2, 4  ;;  %s519_s3 = int_to_ptr.vmem [resolvable:$true] %s518_s3 }
  0xb7   :  { %v197_v26 = vpop.xlane.xlu1 %196  ;;  %v280_v53 = vrot.slane %v206_v36, %v279_v22  ;;  %s612_s27 = scalar_lea.vmem %s519_s3, 32  ;;  %p617_p9 = scmp.lt.s32.totalorder %s519_s3, %s519_s3 }
  0xb8   :  { %v181_v30 = vpop.xlane.xlu0 %180  ;;  %v215_v37 = vmul.f32 0.00390625, %v197_v26  ;;  %v327_v3 = vsel %vm281_vm4, %v326_v50, %v322_v62  ;;  %p613_p8 = scmp.ne.s32.totalorder %s519_s3, %s612_s27  ;;  %p618_p10 = scmp.lt.s32.totalorder %s612_s27, %s612_s27 }
  0xb9   :  { %v207_v41 = vmul.f32 0.00390625, %v181_v30  ;;  %v282_v5 = vsel %vm281_vm4, %v280_v53, %v275_v2 }
  0xba   :  { %v331_v54 = vrot.slane %v215_v37, %v286_v25  ;;  %p619_p11 = por %p618_p10, %p617_p9 }
  0xbb   :  { %v199_v42 = vpop.xlane.xlu1 %198  ;;  %v287_v58 = vrot.slane %v207_v41, %v286_v25 }
  0xbc   :  { %v216_v46 = vmul.f32 0.00390625, %v199_v42  ;;  %v183_v47 = vpop.xlane.xlu0 %182  ;;  %v332_v6 = vsel %vm288_vm5, %v331_v54, %v327_v3  ;;  %p620_p12 = pnand %p619_p11, %p613_p8 }
  0xbd   :  { %v208_v51 = vmul.f32 0.00390625, %v183_v47  ;;  %v289_v8 = vsel %vm288_vm5, %v287_v58, %v282_v5 }
  0xbe   :  { %v336_v59 = vrot.slane %v216_v46, %v293_v34 }
  0xbf   :  { %v201_v60 = vpop.xlane.xlu1 %200  ;;  %v294_v63 = vrot.slane %v208_v51, %v293_v34 }
  0xc0   :  { %v217_v0 = vmul.f32 0.00390625, %v201_v60  ;;  %v185_v1 = vpop.xlane.xlu0 %184  ;;  %v337_v9 = vsel %vm295_vm6, %v336_v59, %v332_v6 }
  0xc1   :  { %v209_v4 = vmul.f32 0.00390625, %v185_v1  ;;  %v296_v11 = vsel %vm295_vm6, %v294_v63, %v289_v8 }
  0xc2   :  { %v341_v7 = vrot.slane %v217_v0, %v300_v55 }
  0xc3   :  { %v301_v10 = vrot.slane %v209_v4, %v300_v55 }
  0xc4   :  { %v342_v12 = vsel %vm302_vm7, %v341_v7, %v337_v9 }
  0xc5   :  { %v303_v13 = vsel %vm302_vm7, %v301_v10, %v296_v11 }
  0xc6   :  { %v344_v14 = vsel %vm343_vm8, %v342_v12, %v303_v13 }
  0xc7   :  { %560 = vmatmul.mubr.msk.f32.vlgmr.msra.gmra.mrb[0].mxu0 %vm345_vm9, %v344_v14 }
 0x19a   :  { %v414_v17 = vpop.f32.mrb[0].mxu0 }
 0x19b   :  { %v415_v18 = vadd.f32 %v527_v16, %v414_v17  ;;  %v561_v19 = vpop.f32.mrb[1].mxu0 }
 0x19d   :  { %v418_v20 = vmax.f32 %v415_v18, 0.0 }
 0x19f   :  { %565 = vmatmul.mubr.msk.f32.vlgmr.msra.gmra.mrb[0].mxu1 %vm427_vm11, %v418_v20 }
 0x272   :  { %v501_v22 = vpop.f32.mrb[0].mxu1 }
 0x273   :  { %v502_v23 = vadd.f32 %v529_v21, %v501_v22  ;;  %v566_v24 = vpop.f32.mrb[1].mxu1 }
 0x275   :  { %v505_v25 = vsub.f32 0.0, %v502_v23 }
 0x277   :  { %v506_v26 = vmul.f32 1.442695, %v505_v25 }
 0x279   :  { %586 = vpow2.f32 %v506_v26 }
 0x283   :  { %v587_v27 = vpop.eup %586 }
 0x284   :  { %v508_v28 = vadd.f32 1.0, %v587_v27 }
 0x286   :  { %588 = vrcp.f32 %v508_v28 }
 0x290   :  { %v589_v29 = vpop.eup %588 }
 0x291   :  { %511 = vst.msk [vmem:[#allocation6] sm:$0x3] %vm510_vm12, %v589_v29 }
 0x292   :  { %623 = shalt.err (!%p620_p12)
}
 0x293   :  { %s624_s29 = scalar_lea.hbm %s749_s5, 32 }
 0x294   :  { %p625_p13 = scmp.ne.s32.totalorder %s749_s5, %s624_s29  ;;  %p628_p0 = scmp.lt.u32.totalorder %s624_s29, %s749_s5 }
 0x296   :  { %p630_p1 = pnand %p628_p0, %p625_p13 }
 0x298   :  { %633 = shalt.err (!%p630_p1)
}
 0x299   :  { %521 = dma.vmem_to_hbm [thread:$0]  %s519_s3, 32, %s749_s5, [#allocation5]  }
 0x29a   :  { %636 = dma.done.wait [#allocation5], 32  }
 0x29b   :  { %637 = vsyncadd [#allocation5], 4294967264 }
 0x29c   :  { %525 = vsyncpa [#allocation4], 1 }
 0x29d   :  { %526 = vsyncpa [#allocation5], 1 }

</bundles_post_ra>
